<compile_context>
chip_gen: v6e
topology: v6e:2x2x1
jax: 0.10.0
libtpu: 0.0.40
codegen_flags: <defaults>
</compile_context>

<pallas_src>
import numpy as np
import jax
import jax.numpy as jnp
from jax.experimental import pallas as pl
from jax.experimental.pallas import tpu as pltpu

TARGET_SIZE = (12, 20)   # module's `size` = (out_h, out_w), small for the demo
PADDING_RATIO = 0.5
NORMAL_RESIZE = 0.0      # probability branch disabled -> deterministic path
# TODO(synk): host-side randomness (`random.random() < normal_resize`,
#             `padding_ratio == -1`) and torchvision's antialias=True bilinear
#             filter have no Pallas equivalent; this implements the
#             deterministic letterbox path with plain bilinear
#             (align_corners=False) interpolation.


# ---------------- host-side (trace-time) planning ----------------

def _bilinear_matrix(out_size: int, in_size: int) -> np.ndarray:
    """Row-stochastic bilinear interpolation matrix, align_corners=False."""
    scale = in_size / out_size
    dst = np.arange(out_size, dtype=np.float64)
    src = np.clip((dst + 0.5) * scale - 0.5, 0.0, in_size - 1)
    i0 = np.floor(src).astype(np.int64)
    i1 = np.minimum(i0 + 1, in_size - 1)
    w1 = (src - i0).astype(np.float32)
    w0 = 1.0 - w1
    m = np.zeros((out_size, in_size), dtype=np.float32)
    rows = np.arange(out_size)
    np.add.at(m, (rows, i0), w0)
    np.add.at(m, (rows, i1), w1)
    return m


def _plan_geometry(h, w, size, padding_ratio):
    """Static ratio / padding math, mirroring the module (Python round())."""
    ratio_h = size[0] / h
    ratio_w = size[1] / w
    if ratio_h < ratio_w:
        ratio, dim = ratio_h, 2          # pad width (left/right)
    else:
        ratio, dim = ratio_w, 1          # pad height (top/bottom)
    new_h = round(h * ratio)
    new_w = round(w * ratio)
    pad_total = (size[0] - new_h) if dim == 1 else (size[1] - new_w)
    pad1 = round(pad_total * padding_ratio)
    return dim, pad1, new_h, new_w


def _build_matrices(c, h, w, size, dim, pad1, new_h, new_w):
    """Padding-folded interpolation matrices + channel block-diagonal A."""
    out_h, out_w = size
    a = _bilinear_matrix(new_h, h)                               # (new_h, h)
    bt = np.ascontiguousarray(_bilinear_matrix(new_w, w).T)      # (w, new_w)
    off_h = pad1 if dim == 1 else 0
    off_w = pad1 if dim == 2 else 0
    a_full = np.zeros((out_h, h), np.float32)
    a_full[off_h:off_h + new_h, :] = a                           # zero pad rows
    bt_full = np.zeros((w, out_w), np.float32)
    bt_full[:, off_w:off_w + new_w] = bt                         # zero pad cols
    # Block-diagonal A over channels -> one fat matmul, no per-channel slices.
    a_bd = np.zeros((c * out_h, c * h), np.float32)
    for ci in range(c):
        a_bd[ci * out_h:(ci + 1) * out_h, ci * h:(ci + 1) * h] = a_full
    return a_bd, bt_full


def _choose_order(c, h, w, out_h, out_w):
    """Static contraction-order choice: FLOPs + lane alignment of first matmul."""
    fl_h = 2 * (c * out_h) * (c * h) * w + 2 * (c * out_h) * w * out_w   # A first
    fl_w = 2 * (c * h) * w * out_w + 2 * (c * out_h) * (c * h) * out_w   # B^T first
    al_h = (w % 128 == 0)
    al_w = (out_w % 128 == 0)
    if al_h != al_w:
        if al_h and fl_h <= 1.5 * fl_w:
            return True, fl_h
        if al_w and fl_w <= 1.5 * fl_h:
            return False, fl_w
    return (True, fl_h) if fl_h <= fl_w else (False, fl_w)


# ---------------- fused Pallas kernel ----------------

def _make_fused_kernel(out_dtype, compute_dtype, h_first, has_anchors,
                       dim, pad1, scale, target):
    integral = jnp.issubdtype(np.dtype(out_dtype), jnp.integer)
    if integral:
        info = np.iinfo(np.dtype(out_dtype))
        lo, hi = float(info.min), float(info.max)
    c_lo, c_hi = (1, 3) if dim == 1 else (0, 2)

    def kernel(*refs):
        if has_anchors:
            a_ref, x_ref, bt_ref, anc_ref, o_img_ref, o_anc_ref = refs
        else:
            a_ref, x_ref, bt_ref, o_img_ref = refs

        a_bd = a_ref[...]                          # (c*out_h, c*h)
        bt = bt_ref[...]                           # (w, out_w), pad folded in
        x = x_ref[...].astype(compute_dtype)       # (c*h, w)

        # out = A_bd @ X @ B^T  — two fat MXU matmuls, f32 accumulation,
        # order chosen statically; no slices, no concat/stack, no relayouts.
        if h_first:
            t = jnp.dot(a_bd, x,
                        preferred_element_type=jnp.float32).astype(compute_dtype)
            out = jnp.dot(t, bt, preferred_element_type=jnp.float32)
        else:
            t = jnp.dot(x, bt,
                        preferred_element_type=jnp.float32).astype(compute_dtype)
            out = jnp.dot(a_bd, t, preferred_element_type=jnp.float32)

        if integral:
            out = jnp.clip(jnp.round(out), lo, hi)

        # Single full-slab, lane-dense store (c*out_h, out_w).
        o_img_ref[...] = out.astype(o_img_ref.dtype)

        # ---- fused anchor remap (few VPU ops, no extra kernel launch) ----
        if has_anchors:
            anc = anc_ref[...].astype(jnp.float32)
            cols = jax.lax.broadcasted_iota(jnp.int32, anc.shape, 1)
            moved = (jnp.float32(pad1) + anc * jnp.float32(scale)) \
                / jnp.float32(target)
            res = jnp.where((cols == c_lo) | (cols == c_hi), moved, anc)
            res = jnp.where(cols < 4, jnp.clip(res, 0.0, 1.0), res)
            o_anc_ref[...] = res.astype(o_anc_ref.dtype)

    return kernel


# ---------------- wrapper ----------------

def letterbox_resize(image, anchors, size=TARGET_SIZE,
                     padding_ratio=PADDING_RATIO,
                     compute_dtype=jnp.float32):
    c, h, w = image.shape
    out_h, out_w = size
    dim, pad1, new_h, new_w = _plan_geometry(h, w, size, padding_ratio)
    a_bd_np, bt_np = _build_matrices(c, h, w, size, dim, pad1, new_h, new_w)
    h_first, flops = _choose_order(c, h, w, out_h, out_w)

    a_bd = jnp.asarray(a_bd_np, dtype=compute_dtype)   # (c*out_h, c*h)
    bt = jnp.asarray(bt_np, dtype=compute_dtype)       # (w, out_w)
    x_flat = image.reshape(c * h, w)                   # contiguous, zero-cost

    scale = float(new_h if dim == 1 else new_w)
    target = float(out_h if dim == 1 else out_w)
    has_anchors = anchors.shape[0] > 0

    kernel = _make_fused_kernel(image.dtype, compute_dtype, h_first,
                                has_anchors, dim, pad1, scale, target)

    in_specs = [
        pl.BlockSpec((c * out_h, c * h), lambda: (0, 0)),
        pl.BlockSpec((c * h, w), lambda: (0, 0)),
        pl.BlockSpec((w, out_w), lambda: (0, 0)),
    ]
    out_shape = [jax.ShapeDtypeStruct((c * out_h, out_w), image.dtype)]
    out_specs = [pl.BlockSpec((c * out_h, out_w), lambda: (0, 0))]
    args = [a_bd, x_flat, bt]
    if has_anchors:
        in_specs.append(pl.BlockSpec(anchors.shape, lambda: (0, 0)))
        out_shape.append(jax.ShapeDtypeStruct(anchors.shape, anchors.dtype))
        out_specs.append(pl.BlockSpec(anchors.shape, lambda: (0, 0)))
        args.append(anchors)

    itemsize = np.dtype(image.dtype).itemsize
    bytes_accessed = int(
        x_flat.size * itemsize + c * out_h * out_w * itemsize
        + a_bd.size * np.dtype(compute_dtype).itemsize
        + bt.size * np.dtype(compute_dtype).itemsize
        + (2 * anchors.size * np.dtype(anchors.dtype).itemsize
           if has_anchors else 0))
    cost = pl.CostEstimate(flops=int(flops), transcendentals=0,
                           bytes_accessed=bytes_accessed)

    # TODO(synk): production sizes need a banded-tiling grid (scalar-prefetched
    #             source-row offsets), a "parallel" tile/batch axis for v7x's
    #             two TensorCores, and tiles budgeted for v7x's 64 MiB VMEM.
    results = pl.pallas_call(
        kernel,
        out_shape=tuple(out_shape),
        in_specs=in_specs,
        out_specs=tuple(out_specs),
        compiler_params=pltpu.CompilerParams(
            vmem_limit_bytes=48 * 1024 * 1024),
        cost_estimate=cost,
    )(*args)

    if has_anchors:
        out_flat, out_anchors = results
    else:
        (out_flat,) = results
        out_anchors = anchors
    out_image = out_flat.reshape(c, out_h, out_w)      # contiguous, zero-cost
    return out_image, out_anchors


# ---------------- reference (pure numpy) for a silent sanity check ----------------

def _reference(image, anchors, size, padding_ratio):
    c, h, w = image.shape
    dim, pad1, new_h, new_w = _plan_geometry(h, w, size, padding_ratio)
    a = _bilinear_matrix(new_h, h)
    bt = np.ascontiguousarray(_bilinear_matrix(new_w, w).T)
    img = np.asarray(image, np.float32)
    interior = np.einsum('oh,chw,wp->cop', a, img, bt)   # (c, new_h, new_w)
    out = np.zeros((c, size[0], size[1]), np.float32)
    if dim == 1:
        out[:, pad1:pad1 + new_h, :] = interior
    else:
        out[:, :, pad1:pad1 + new_w] = interior
    anc = np.asarray(anchors, np.float32).copy()
    if anc.shape[0] > 0:
        if dim == 1:
            anc[:, [1, 3]] = (pad1 + anc[:, [1, 3]] * new_h) / size[0]
        else:
            anc[:, [0, 2]] = (pad1 + anc[:, [0, 2]] * new_w) / size[1]
        anc[:, :4] = np.clip(anc[:, :4], 0.0, 1.0)
    return out, anc


if __name__ == "__main__":
    key = jax.random.PRNGKey(0)
    k_img, k_anc = jax.random.split(key)

    C, H, W = 3, 16, 24                       # small CHW input image
    image = jax.random.uniform(k_img, (C, H, W), dtype=jnp.float32)
    anchors = jax.random.uniform(k_anc, (6, 5), dtype=jnp.float32)  # [x1,y1,x2,y2,cls]

    out_img, out_anchors = letterbox_resize(image, anchors)
    out_img = jax.block_until_ready(out_img)
    out_anchors = jax.block_until_ready(out_anchors)

    ref_img, ref_anc = _reference(np.asarray(image), np.asarray(anchors),
                                  TARGET_SIZE, PADDING_RATIO)
    np.testing.assert_allclose(np.asarray(out_img), ref_img, rtol=1e-5, atol=1e-5)
    np.testing.assert_allclose(np.asarray(out_anchors), ref_anc, rtol=1e-5, atol=1e-5)

    assert out_img.shape == (C, TARGET_SIZE[0], TARGET_SIZE[1])
    print("KERNEL_OK")
</pallas_src>

<mosaic_0001>
module attributes {stable_mosaic.version = 11 : i64} {
  func.func @kernel(%arg0: memref<36x48xf32, #tpu.memory_space<vmem>>, %arg1: memref<48x24xf32, #tpu.memory_space<vmem>>, %arg2: memref<24x20xf32, #tpu.memory_space<vmem>>, %arg3: memref<6x5xf32, #tpu.memory_space<vmem>>, %arg4: memref<36x20xf32, #tpu.memory_space<vmem>>, %arg5: memref<6x5xf32, #tpu.memory_space<vmem>>) attributes {dimension_semantics = [], scalar_prefetch = 0 : i64, scratch_operands = 0 : i64, tpu.core_type = #tpu.core_type<tc>} {
    %c0 = arith.constant 0 : index
    %c0_0 = arith.constant 0 : index
    %0 = vector.load %arg0[%c0, %c0_0] : memref<36x48xf32, #tpu.memory_space<vmem>>, vector<36x48xf32>
    %c0_1 = arith.constant 0 : index
    %c0_2 = arith.constant 0 : index
    %1 = vector.load %arg2[%c0_1, %c0_2] : memref<24x20xf32, #tpu.memory_space<vmem>>, vector<24x20xf32>
    %c0_3 = arith.constant 0 : index
    %c0_4 = arith.constant 0 : index
    %2 = vector.load %arg1[%c0_3, %c0_4] : memref<48x24xf32, #tpu.memory_space<vmem>>, vector<48x24xf32>
    %cst = arith.constant dense<0.000000e+00> : vector<48x20xf32>
    %3 = tpu.matmul %2, %1, %cst {dimension_numbers = #tpu.dot_dimension_numbers<[1], [0], [0], [1], [0, 0, 1, 1], [], []>} : vector<48x24xf32>, vector<24x20xf32>, vector<48x20xf32> -> vector<48x20xf32>
    %cst_5 = arith.constant dense<0.000000e+00> : vector<36x20xf32>
    %4 = tpu.matmul %0, %3, %cst_5 {dimension_numbers = #tpu.dot_dimension_numbers<[1], [0], [0], [1], [0, 0, 1, 1], [], []>} : vector<36x48xf32>, vector<48x20xf32>, vector<36x20xf32> -> vector<36x20xf32>
    %c0_6 = arith.constant 0 : index
    %c0_7 = arith.constant 0 : index
    %5 = vector.load %arg4[%c0_6, %c0_7] : memref<36x20xf32, #tpu.memory_space<vmem>>, vector<36x20xf32>
    tpu.vector_store %arg4[%c0_6, %c0_7], %4 {strides = array<i32>} : memref<36x20xf32, #tpu.memory_space<vmem>>, vector<36x20xf32>,
    %c0_8 = arith.constant 0 : index
    %c0_9 = arith.constant 0 : index
    %6 = vector.load %arg3[%c0_8, %c0_9] : memref<6x5xf32, #tpu.memory_space<vmem>>, vector<6x5xf32>
    %7 = tpu.iota {dimensions = array<i32: 1>} : vector<6x5xi32>
    %cst_10 = arith.constant 1.800000e+01 : f32
    %8 = vector.broadcast %cst_10 : f32 to vector<6x5xf32>
    %9 = arith.mulf %6, %8 : vector<6x5xf32>
    %cst_11 = arith.constant 1.000000e+00 : f32
    %10 = vector.broadcast %cst_11 : f32 to vector<6x5xf32>
    %11 = arith.addf %10, %9 : vector<6x5xf32>
    %cst_12 = arith.constant 2.000000e+01 : f32
    %12 = vector.broadcast %cst_12 : f32 to vector<6x5xf32>
    %13 = arith.divf %11, %12 : vector<6x5xf32>
    %c0_i32 = arith.constant 0 : i32
    %14 = vector.broadcast %c0_i32 : i32 to vector<6x5xi32>
    %15 = arith.cmpi eq, %7, %14 : vector<6x5xi32>
    %c2_i32 = arith.constant 2 : i32
    %16 = vector.broadcast %c2_i32 : i32 to vector<6x5xi32>
    %17 = arith.cmpi eq, %7, %16 : vector<6x5xi32>
    %18 = arith.ori %15, %17 : vector<6x5xi1>
    %19 = arith.select %18, %13, %6 : vector<6x5xi1>, vector<6x5xf32>
    %c4_i32 = arith.constant 4 : i32
    %20 = vector.broadcast %c4_i32 : i32 to vector<6x5xi32>
    %21 = arith.cmpi slt, %7, %20 : vector<6x5xi32>
    %cst_13 = arith.constant 0.000000e+00 : f32
    %cst_14 = arith.constant 1.000000e+00 : f32
    %22 = vector.broadcast %cst_13 : f32 to vector<6x5xf32>
    %23 = arith.maximumf %22, %19 : vector<6x5xf32>
    %24 = vector.broadcast %cst_14 : f32 to vector<6x5xf32>
    %25 = arith.minimumf %24, %23 : vector<6x5xf32>
    %26 = arith.select %21, %25, %19 : vector<6x5xi1>, vector<6x5xf32>
    %c0_15 = arith.constant 0 : index
    %c0_16 = arith.constant 0 : index
    %27 = vector.load %arg5[%c0_15, %c0_16] : memref<6x5xf32, #tpu.memory_space<vmem>>, vector<6x5xf32>
    tpu.vector_store %arg5[%c0_15, %c0_16], %26 {strides = array<i32>} : memref<6x5xf32, #tpu.memory_space<vmem>>, vector<6x5xf32>,
    return
  }
}

</mosaic_0001>

<bundles_post_ra>
// kernel: tpu_custom_call.1
= control target key start
LH: loop header
LB: loop body
LE: loop exit
PB: predicated region body
PF: predicated region fallthrough
CT: control target
= control target key end

     0   :  { %vm34_vm0 = vcmask 195584   ;;  %s518_s0 = inlined_call_operand.vmem [shape: f32[36,48], index: 0, kind: input, shape index: {}]   ;;  %s519_s1 = inlined_call_operand.vmem [shape: f32[48,24], index: 1, kind: input, shape index: {}]   ;;  %s520_s2 = inlined_call_operand.vmem [shape: f32[24,20], index: 2, kind: input, shape index: {}]   ;;  %s521_s3 = inlined_call_operand.vmem [shape: f32[6,5], index: 3, kind: input, shape index: {}]   ;;  %s522_s4 = inlined_call_operand.vmem [shape: f32[36,20], index: 4, kind: output, shape index: {0}]   ;;  %s523_s5 = inlined_call_operand.hbm [shape: f32[6,5], index: 5, kind: output, shape index: {1}]  }
   0x1   :  { %v27_v0 = vld [vmem:[%s520_s2 + $0x10] sm:$0xff]  ;;  %v26_v1 = vld [vmem:[%s520_s2 + $0x8] sm:$0xff]  ;;  %v28_v2 = vld [vmem:[%s519_s1] sm:$0xff] }
   0x2   :  { %327 = vmatprep.subr.mxu0 %v27_v0  ;;  %v25_v3 = vld [vmem:[%s520_s2] sm:$0xff]  ;;  %333 = vmatprep.mubr.msk.f32.mxu0 %vm34_vm0, %v28_v2 }
   0x3   :  { %328 = vmatpush3.msra.mxu0 %v27_v0 }
   0x4   :  { %329 = vmatprep.subr.mxu0 %v26_v1 }
   0x5   :  { %11 = vsyncpa [#allocation3], 0  ;;  %330 = vmatpush3.msra.mxu0 %v26_v1  ;;  %v29_v4 = vld [vmem:[%s519_s1 + $0x8] sm:$0xff]  ;;  %v30_v5 = vld [vmem:[%s519_s1 + $0x10] sm:$0xff]  ;;  %v406_v9 = vmov 0.0   ;;  %vm407_vm1 = vmmov 0   ;;  %v262_v22 = vlaneseq }
   0x6   :  { %331 = vmatprep.subr.mxu0 %v25_v3  ;;  %v31_v6 = vld [vmem:[%s519_s1 + $0x18] sm:$0xff]  ;;  %v32_v7 = vld [vmem:[%s519_s1 + $0x20] sm:$0xff]  ;;  %v33_v8 = vld [vmem:[%s519_s1 + $0x28] sm:$0xff]  ;;  %369 = vmatprep.subr.mxu1 %v406_v9  ;;  %vm148_vm2 = vcmask 392192   ;;  %vm276_vm7 = vcmask 37888  }
   0x7   :  { %332 = vmatpush3.msra.mxu0 %v25_v3  ;;  %357 = vmatprep.mubr.msk.f32.mxu1 %vm407_vm1, %v406_v9  ;;  %v21_v16 = vld [vmem:[%s518_s0 + $0x8] sm:$0xff]  ;;  %v20_v17 = vld [vmem:[%s518_s0] sm:$0xff]  ;;  %v22_v18 = vld [vmem:[%s518_s0 + $0x10] sm:$0xff]  ;;  %v263_v24 = vand.u32 127, %v262_v22 }
   0x8   :  { %334 = vmatmul.mubr.msk.f32.vlgmr.msra.gmra.mxu0 %vm34_vm0, %v29_v4  ;;  %342 = vmatprep.subr.mxu0 %v406_v9  ;;  %v23_v19 = vld [vmem:[%s518_s0 + $0x18] sm:$0xff]  ;;  %v24_v20 = vld [vmem:[%s518_s0 + $0x20] sm:$0xf]  ;;  %s408_s0 = smov [#allocation2]  }
   0x9   :  { %336 = vmatprep.mubr.msk.f32.mxu0 %vm34_vm0, %v30_v5  ;;  %v261_v21 = vld [vmem:[%s521_s3] sm:$0x3f]  ;;  %vm268_vm3 = vcmp.eq.s32.totalorder %v263_v24, 0  ;;  %vm269_vm4 = vcmp.eq.s32.totalorder %v263_v24, 2  ;;  %vm272_vm6 = vcmp.lt.s32.totalorder %v263_v24, 4  ;;  %s286_s21 = sshll.u32 %s408_s0, 4  ;;  %s287_s21 = int_to_ptr.vmem [resolvable:$true] %s286_s21 }
   0xa   :  { %v264_v23 = vmul.f32 18.0, %v261_v21  ;;  %vm270_vm5 = vmor %vm268_vm3, %vm269_vm4  ;;  %s384_s22 = scalar_lea.vmem %s287_s21, 128  ;;  %p389_p1 = scmp.lt.s32.totalorder %s287_s21, %s287_s21 }
   0xb   :  { %p385_p0 = scmp.ne.s32.totalorder %s287_s21, %s384_s22  ;;  %p390_p2 = scmp.lt.s32.totalorder %s384_s22, %s384_s22 }
   0xc   :  { %337 = vmatmul.mubr.msk.f32.gmra.mxu0 %vm34_vm0, %v31_v6  ;;  %v265_v25 = vadd.f32 1.0, %v264_v23 }
   0xd   :  { %339 = vmatprep.mubr.msk.f32.mxu0 %vm34_vm0, %v32_v7  ;;  %p391_p3 = por %p390_p2, %p389_p1 }
   0xe   :  { %v267_v26 = vmul.f32 0.05, %v265_v25 }
   0xf   :  { %p392_p4 = pnand %p391_p3, %p385_p0 }
  0x10   :  { %340 = vmatmul.mubr.msk.f32.gmra.mxu0 %vm34_vm0, %v33_v8  ;;  %v271_v27 = vsel %vm270_vm5, %v267_v26, %v261_v21 }
  0x11   :  { %354 = vmatprep.mubr.msk.f32.mxu0 %vm407_vm1, %v406_v9  ;;  %v273_v28 = vmax.f32 %v271_v27, 0.0 }
  0x13   :  { %v274_v29 = vmin.f32 %v273_v28, 1.0 }
  0x15   :  { %v275_v30 = vsel %vm272_vm6, %v274_v29, %v271_v27 }
  0x16   :  { %277 = vst.msk [vmem:[#allocation2] sm:$0x3f] %vm276_vm7, %v275_v30 }
  0xc8   :  { %v335_v10 = vpop.f32.mrf.mxu0 }
  0xca   :  { %v119_v11 = vpop.f32.mrf.mxu0 }
  0xcc   :  { %v338_v12 = vpop.f32.mrf.mxu0 }
  0xce   :  { %v129_v13 = vpop.f32.mrf.mxu0 }
  0xd0   :  { %v341_v14 = vpop.f32.mrf.mxu0 }
  0xd1   :  { %343 = vmatpush3.msra.mxu0 %v341_v14  ;;  %375 = vmatpush3.msra.mxu1 %v341_v14 }
  0xd2   :  { %v139_v15 = vpop.f32.mrf.mxu0  ;;  %344 = vmatprep.subr.mxu0 %v406_v9  ;;  %370 = vmatprep.subr.mxu1 %v406_v9 }
  0xd3   :  { %345 = vmatpush3.msra.mxu0 %v139_v15  ;;  %376 = vmatpush3.msra.mxu1 %v139_v15 }
  0xd4   :  { %346 = vmatprep.subr.mxu0 %v406_v9  ;;  %371 = vmatprep.subr.mxu1 %v406_v9 }
  0xd5   :  { %347 = vmatpush3.msra.mxu0 %v338_v12  ;;  %377 = vmatpush3.msra.mxu1 %v338_v12 }
  0xd6   :  { %348 = vmatprep.subr.mxu0 %v406_v9  ;;  %372 = vmatprep.subr.mxu1 %v406_v9 }
  0xd7   :  { %349 = vmatpush3.msra.mxu0 %v129_v13  ;;  %378 = vmatpush3.msra.mxu1 %v129_v13 }
  0xd8   :  { %350 = vmatprep.subr.mxu0 %v406_v9  ;;  %373 = vmatprep.subr.mxu1 %v406_v9 }
  0xd9   :  { %351 = vmatpush3.msra.mxu0 %v335_v10  ;;  %379 = vmatpush3.msra.mxu1 %v335_v10 }
  0xda   :  { %352 = vmatprep.subr.mxu0 %v406_v9  ;;  %374 = vmatprep.subr.mxu1 %v406_v9 }
  0xdb   :  { %353 = vmatpush3.msra.mxu0 %v119_v11  ;;  %380 = vmatpush3.msra.mxu1 %v119_v11 }
  0xdc   :  { %358 = vmatmul.mubr.msk.f32.vlgmr.msra.gmra.mxu1 %vm148_vm2, %v21_v16  ;;  %355 = vmatmul.mubr.msk.f32.vlgmr.msra.gmra.mxu0 %vm148_vm2, %v20_v17 }
  0xdd   :  { %360 = vmatprep.mubr.msk.f32.mxu1 %vm407_vm1, %v406_v9 }
  0xe0   :  { %361 = vmatmul.mubr.msk.f32.gmra.mxu1 %vm148_vm2, %v22_v18 }
  0xe1   :  { %363 = vmatprep.mubr.msk.f32.mxu1 %vm407_vm1, %v406_v9 }
  0xe4   :  { %364 = vmatmul.mubr.msk.f32.gmra.mxu1 %vm148_vm2, %v23_v19 }
  0xe5   :  { %366 = vmatprep.mubr.msk.f32.mxu1 %vm407_vm1, %v406_v9 }
  0xe8   :  { %367 = vmatmul.mubr.msk.f32.gmra.mxu1 %vm148_vm2, %v24_v20 }
  0xe9   :  { %395 = shalt.err (!%p392_p4)
}
  0xea   :  { %289 = dma.vmem_to_hbm [thread:$0]  %s287_s21, 128, %s523_s5, [#allocation3]   ;;  %vm254_vm8 = vcmask 162816   ;;  %vm259_vm9 = vcmask 158720  }
 0x19c   :  { %v235_v31 = vpop.f32.mrf.mxu1  ;;  %v230_v32 = vpop.f32.mrf.mxu0 }
 0x19d   :  { %256 = vst.msk [vmem:[%s522_s4 + $0x8] sm:$0xff] %vm254_vm8, %v235_v31  ;;  %255 = vst.msk [vmem:[%s522_s4] sm:$0xff] %vm254_vm8, %v230_v32 }
 0x19e   :  { %v359_v33 = vpop.f32.mrf.mxu1  ;;  %v356_v34 = vpop.f32.mrf.mxu0 }
 0x1a0   :  { %v240_v35 = vpop.f32.mrf.mxu1 }
 0x1a1   :  { %257 = vst.msk [vmem:[%s522_s4 + $0x10] sm:$0xff] %vm254_vm8, %v240_v35 }
 0x1a2   :  { %v362_v36 = vpop.f32.mrf.mxu1 }
 0x1a4   :  { %v245_v37 = vpop.f32.mrf.mxu1 }
 0x1a5   :  { %258 = vst.msk [vmem:[%s522_s4 + $0x18] sm:$0xff] %vm254_vm8, %v245_v37 }
 0x1a6   :  { %v365_v38 = vpop.f32.mrf.mxu1 }
 0x1a8   :  { %v250_v39 = vpop.f32.mrf.mxu1 }
 0x1a9   :  { %260 = vst.msk [vmem:[%s522_s4 + $0x20] sm:$0xf] %vm259_vm9, %v250_v39 }
 0x1aa   :  { %v368_v40 = vpop.f32.mrf.mxu1 }
 0x1ab   :  { %404 = dma.done.wait [#allocation3], 128  }
 0x1ac   :  { %405 = vsyncadd [#allocation3], 4294967168 }
 0x1ad   :  { %295 = vsyncpa [#allocation3], 1 }

</bundles_post_ra>
